<compile_context>
chip_gen: v7x
topology: tpu7x:2x2x1
jax: 0.10.0
libtpu: 0.0.40
codegen_flags: <defaults>
</compile_context>

<pallas_src>
import functools

import jax
import jax.numpy as jnp
from jax.experimental import pallas as pl
from jax.experimental.pallas import tpu as pltpu


def _round_up(x, m):
    return (x + m - 1) // m * m


def _fused_sage_kernel(a_ref, x_ref, w_ref, b_ref, o_ref, h_ref, acc_ref, *,
                       tile, n_layers):
    """Grid = (layer l, dst-tile m, src-tile k); k is the reduction axis.

    a_ref  : [tile, tile]  bf16   A_mean block (m, k)
    x_ref  : [tile, dp]    bf16   input-feature row block k (used to seed scratch)
    w_ref  : [2*dp, dp]    bf16   stacked [W_self; W_neigh] for layer l
    b_ref  : [1, dp]       f32    bias for layer l
    o_ref  : [tile, dp]    f32    output row block m (written only at l==last)
    h_ref  : [L, Np, dp]   bf16   resident features: buf 0 = X, buf l = input of layer l
    acc_ref: [tile, dp]    f32    aggregation accumulator
    """
    l = pl.program_id(0)
    m = pl.program_id(1)
    k = pl.program_id(2)
    nk = pl.num_programs(2)

    # Seed layer-0 input features into the resident VMEM scratch once
    # (during the first m-tile of layer 0 the k axis streams all row blocks of X).
    @pl.when(jnp.logical_and(l == 0, m == 0))
    def _seed():
        h_ref[0, pl.ds(pl.multiple_of(k * tile, tile), tile), :] = x_ref[...]

    @pl.when(k == 0)
    def _init():
        acc_ref[...] = jnp.zeros_like(acc_ref)

    # Partial mean-aggregation product for this K tile: [tile, tile] @ [tile, dp].
    src = h_ref[l, pl.ds(pl.multiple_of(k * tile, tile), tile), :]
    acc_ref[...] += jnp.dot(a_ref[...], src, preferred_element_type=jnp.float32)

    @pl.when(k == nk - 1)
    def _finalize():
        # Self term uses the destination-node features of this layer's input.
        dst = h_ref[l, pl.ds(pl.multiple_of(m * tile, tile), tile), :]      # bf16
        agg = acc_ref[...].astype(jnp.bfloat16)
        # One MXU call for both weight matmuls: [dst | agg] @ [W_self; W_neigh].
        cat = jnp.concatenate([dst, agg], axis=-1)                          # [tile, 2*dp]
        y = jnp.dot(cat, w_ref[...], preferred_element_type=jnp.float32) + b_ref[...]
        y = jnp.where(l < n_layers - 1, jnp.maximum(y, 0.0), y)

        @pl.when(l < n_layers - 1)
        def _store_hidden():
            h_ref[l + 1, pl.ds(pl.multiple_of(m * tile, tile), tile), :] = (
                y.astype(h_ref.dtype))

        @pl.when(l == n_layers - 1)
        def _store_out():
            o_ref[...] = y.astype(o_ref.dtype)


def gnn_forward(a_mean, features, params, *, tile=None):
    """Fused GNNModel.forward: 3 SAGEConv(mean) layers, ReLU between them."""
    n = a_mean.shape[0]
    in_dim = features.shape[1]
    n_layers = len(params)
    d_out = params[-1][0].shape[1]
    widths = [in_dim] + [p[0].shape[1] for p in params]

    bf16, f32 = jnp.bfloat16, jnp.float32

    dp = _round_up(max(widths), 128)                   # lane-dense common width
    if tile is None:
        tile = min(512, _round_up(n, 128))             # keeps VMEM small on v7x too
    npad = _round_up(n, tile)

    # Wrapper-side layout plumbing: pad + cast (zeros contribute nothing).
    a_p = jnp.zeros((npad, npad), bf16).at[:n, :n].set(a_mean.astype(bf16))
    x_p = jnp.zeros((npad, dp), bf16).at[:n, :in_dim].set(features.astype(bf16))

    w_blocks, b_blocks = [], []
    for (w_self, w_neigh, bias) in params:
        di, do = w_self.shape
        ws = jnp.zeros((dp, dp), bf16).at[:di, :do].set(w_self.astype(bf16))
        wn = jnp.zeros((dp, dp), bf16).at[:di, :do].set(w_neigh.astype(bf16))
        w_blocks.append(jnp.concatenate([ws, wn], axis=0))                  # [2*dp, dp]
        b_blocks.append(jnp.zeros((1, dp), f32).at[0, :do].set(bias.astype(f32)))
    w_stack = jnp.stack(w_blocks)                                           # [L, 2*dp, dp]
    b_stack = jnp.stack(b_blocks)                                           # [L, 1, dp]

    n_tiles = npad // tile
    kernel = functools.partial(_fused_sage_kernel, tile=tile, n_layers=n_layers)

    out_p = pl.pallas_call(
        kernel,
        out_shape=jax.ShapeDtypeStruct((npad, dp), f32),
        grid_spec=pltpu.PrefetchScalarGridSpec(
            num_scalar_prefetch=0,
            grid=(n_layers, n_tiles, n_tiles),
            in_specs=[
                pl.BlockSpec((tile, tile), lambda l, m, k: (m, k)),          # A_mean
                pl.BlockSpec((tile, dp), lambda l, m, k: (k, 0)),            # X row-tile
                pl.BlockSpec((None, 2 * dp, dp), lambda l, m, k: (l, 0, 0)),  # [Wself;Wneigh]
                pl.BlockSpec((None, 1, dp), lambda l, m, k: (l, 0, 0)),       # bias
            ],
            out_specs=pl.BlockSpec((tile, dp), lambda l, m, k: (m, 0)),
            scratch_shapes=[
                pltpu.VMEM((n_layers, npad, dp), bf16),   # resident features X/H1/H2
                pltpu.VMEM((tile, dp), f32),              # aggregation accumulator
            ],
        ),
        compiler_params=pltpu.CompilerParams(
            # Layer axis and dst-tile axis must be sequential: later layers read the
            # full previous-layer output from core-local VMEM scratch.
            dimension_semantics=("arbitrary", "arbitrary", "arbitrary"),
        ),
    )(a_p, x_p, w_stack, b_stack)

    return out_p[:n, :d_out]


def gnn_reference(a_mean, features, params):
    """Plain-JAX reference mirroring the kernel's mixed precision
    (bf16 MXU inputs / storage, f32 accumulation + epilogue)."""
    bf16, f32 = jnp.bfloat16, jnp.float32
    a16 = a_mean.astype(bf16)
    h = features.astype(bf16)
    n_layers = len(params)
    y = None
    for idx, (w_self, w_neigh, bias) in enumerate(params):
        agg = jnp.dot(a16, h, preferred_element_type=f32).astype(bf16)
        y = (jnp.dot(h, w_self.astype(bf16), preferred_element_type=f32)
             + jnp.dot(agg, w_neigh.astype(bf16), preferred_element_type=f32)
             + bias.astype(f32))
        if idx < n_layers - 1:
            h = jnp.maximum(y, 0.0).astype(bf16)
    return y


def make_params(key, in_dim, hidden_dim, out_dim):
    dims = [(in_dim, hidden_dim), (hidden_dim, hidden_dim), (hidden_dim, out_dim)]
    params = []
    for (di, do) in dims:
        key, k1, k2 = jax.random.split(key, 3)
        scale = 1.0 / jnp.sqrt(jnp.float32(di))
        w_self = jax.random.normal(k1, (di, do), jnp.float32) * scale
        w_neigh = jax.random.normal(k2, (di, do), jnp.float32) * scale
        bias = jnp.zeros((do,), jnp.float32)   # DGL SAGEConv initializes bias to zeros
        params.append((w_self, w_neigh, bias))
    return params


if __name__ == "__main__":
    key = jax.random.PRNGKey(0)
    k_adj, k_feat, k_par = jax.random.split(key, 3)

    # Small synthetic graph (N deliberately not 8/128-aligned to exercise padding).
    N, in_dim, hidden_dim, out_dim = 100, 16, 32, 8

    # Random adjacency with explicit self-loops, row-normalized -> mean aggregation.
    # (DGL SAGEConv('mean') aggregates over in-neighbors only; self-loops are added
    #  explicitly here, consistent with how A_mean is built.)
    adj = (jax.random.uniform(k_adj, (N, N)) < 0.2).astype(jnp.float32)
    adj = jnp.maximum(adj, jnp.eye(N, dtype=jnp.float32))
    deg = jnp.maximum(adj.sum(axis=1, keepdims=True), 1.0)
    a_mean = adj / deg                        # [N_dst, N_src], rows sum to 1

    features = jax.random.normal(k_feat, (N, in_dim), jnp.float32)
    params = make_params(k_par, in_dim, hidden_dim, out_dim)

    out = jax.block_until_ready(gnn_forward(a_mean, features, params))
    ref = gnn_reference(a_mean, features, params)

    assert out.shape == (N, out_dim)
    assert jnp.allclose(out, ref, atol=2e-3, rtol=2e-3), float(jnp.max(jnp.abs(out - ref)))

    print("KERNEL_OK")
</pallas_src>

<mosaic_0001>
module attributes {stable_mosaic.version = 11 : i64} {
  func.func @_fused_sage_kernel(%arg0: i32, %arg1: i32, %arg2: i32, %arg3: memref<128x128xbf16, #tpu.memory_space<vmem>>, %arg4: memref<128x128xbf16, #tpu.memory_space<vmem>>, %arg5: memref<1x256x128xbf16, #tpu.memory_space<vmem>>, %arg6: memref<1x1x128xf32, #tpu.memory_space<vmem>>, %arg7: memref<128x128xf32, #tpu.memory_space<vmem>>, %arg8: memref<3x128x128xbf16, #tpu.memory_space<vmem>>, %arg9: memref<128x128xf32, #tpu.memory_space<vmem>>) attributes {dimension_semantics = [#tpu.dimension_semantics<arbitrary>, #tpu.dimension_semantics<arbitrary>, #tpu.dimension_semantics<arbitrary>], iteration_bounds = array<i64: 3, 1, 1>, scalar_prefetch = 0 : i64, scratch_operands = 2 : i64, tpu.core_type = #tpu.core_type<tc>, window_params = [{transform_indices = @transform_0, window_bounds = array<i64: 128, 128>}, {transform_indices = @transform_1, window_bounds = array<i64: 128, 128>}, {transform_indices = @transform_2, window_bounds = array<i64: 1, 256, 128>}, {transform_indices = @transform_3, window_bounds = array<i64: 1, 1, 128>}, {transform_indices = @transform_4, window_bounds = array<i64: 128, 128>}]} {
    %c0_i32 = arith.constant 0 : i32
    %0 = arith.cmpi eq, %arg0, %c0_i32 : i32
    %c0_i32_0 = arith.constant 0 : i32
    %1 = arith.cmpi eq, %arg1, %c0_i32_0 : i32
    %2 = arith.andi %0, %1 : i1
    %3 = arith.extui %2 : i1 to i32
    %c0_i32_1 = arith.constant 0 : i32
    %4 = arith.cmpi ne, %3, %c0_i32_1 : i32
    scf.if %4 {
      %c0_12 = arith.constant 0 : index
      %c0_13 = arith.constant 0 : index
      %22 = vector.load %arg4[%c0_12, %c0_13] : memref<128x128xbf16, #tpu.memory_space<vmem>>, vector<128x128xbf16>
      %c128_i32_14 = arith.constant 128 : i32
      %23 = arith.muli %arg2, %c128_i32_14 : i32
      %24 = tpu.assume_multiple %23, 128 : i32
      %c0_15 = arith.constant 0 : index
      %25 = arith.index_cast %24 : i32 to index
      %c0_16 = arith.constant 0 : index
      %26 = vector.load %arg8[%c0_15, %25, %c0_16] : memref<3x128x128xbf16, #tpu.memory_space<vmem>>, vector<1x128x128xbf16>
      %27 = vector.shape_cast %26 : vector<1x128x128xbf16> to vector<128x128xbf16>
      %28 = vector.shape_cast %22 : vector<128x128xbf16> to vector<1x128x128xbf16>
      tpu.vector_store %arg8[%c0_15, %25, %c0_16], %28 {strides = array<i32>} : memref<3x128x128xbf16, #tpu.memory_space<vmem>>, vector<1x128x128xbf16>,
    } else {
    }
    %c0_i32_2 = arith.constant 0 : i32
    %5 = arith.cmpi eq, %arg2, %c0_i32_2 : i32
    %6 = arith.extui %5 : i1 to i32
    %c0_i32_3 = arith.constant 0 : i32
    %7 = arith.cmpi ne, %6, %c0_i32_3 : i32
    scf.if %7 {
      %cst_12 = arith.constant 0.000000e+00 : f32
      %22 = vector.broadcast %cst_12 : f32 to vector<128x128xf32>
      %c0_13 = arith.constant 0 : index
      %c0_14 = arith.constant 0 : index
      %23 = vector.load %arg9[%c0_13, %c0_14] : memref<128x128xf32, #tpu.memory_space<vmem>>, vector<128x128xf32>
      tpu.vector_store %arg9[%c0_13, %c0_14], %22 {strides = array<i32>} : memref<128x128xf32, #tpu.memory_space<vmem>>, vector<128x128xf32>,
    } else {
    }
    %c128_i32 = arith.constant 128 : i32
    %8 = arith.muli %arg2, %c128_i32 : i32
    %9 = tpu.assume_multiple %8, 128 : i32
    %10 = arith.index_cast %arg0 : i32 to index
    %11 = arith.index_cast %9 : i32 to index
    %c0 = arith.constant 0 : index
    %12 = vector.load %arg8[%10, %11, %c0] : memref<3x128x128xbf16, #tpu.memory_space<vmem>>, vector<1x128x128xbf16>
    %13 = vector.shape_cast %12 : vector<1x128x128xbf16> to vector<128x128xbf16>
    %c0_4 = arith.constant 0 : index
    %c0_5 = arith.constant 0 : index
    %14 = vector.load %arg9[%c0_4, %c0_5] : memref<128x128xf32, #tpu.memory_space<vmem>>, vector<128x128xf32>
    %c0_6 = arith.constant 0 : index
    %c0_7 = arith.constant 0 : index
    %15 = vector.load %arg3[%c0_6, %c0_7] : memref<128x128xbf16, #tpu.memory_space<vmem>>, vector<128x128xbf16>
    %cst = arith.constant dense<0.000000e+00> : vector<128x128xf32>
    %16 = tpu.matmul %15, %13, %cst {dimension_numbers = #tpu.dot_dimension_numbers<[1], [0], [0], [1], [0, 0, 1, 1], [], []>} : vector<128x128xbf16>, vector<128x128xbf16>, vector<128x128xf32> -> vector<128x128xf32>
    %17 = arith.addf %14, %16 : vector<128x128xf32>
    %c0_8 = arith.constant 0 : index
    %c0_9 = arith.constant 0 : index
    %18 = vector.load %arg9[%c0_8, %c0_9] : memref<128x128xf32, #tpu.memory_space<vmem>>, vector<128x128xf32>
    tpu.vector_store %arg9[%c0_8, %c0_9], %17 {strides = array<i32>} : memref<128x128xf32, #tpu.memory_space<vmem>>, vector<128x128xf32>,
    %c0_i32_10 = arith.constant 0 : i32
    %19 = arith.cmpi eq, %arg2, %c0_i32_10 : i32
    %20 = arith.extui %19 : i1 to i32
    %c0_i32_11 = arith.constant 0 : i32
    %21 = arith.cmpi ne, %20, %c0_i32_11 : i32
    scf.if %21 {
      %c128_i32_12 = arith.constant 128 : i32
      %22 = arith.muli %arg1, %c128_i32_12 : i32
      %23 = tpu.assume_multiple %22, 128 : i32
      %24 = arith.index_cast %arg0 : i32 to index
      %25 = arith.index_cast %23 : i32 to index
      %c0_13 = arith.constant 0 : index
      %26 = vector.load %arg8[%24, %25, %c0_13] : memref<3x128x128xbf16, #tpu.memory_space<vmem>>, vector<1x128x128xbf16>
      %27 = vector.shape_cast %26 : vector<1x128x128xbf16> to vector<128x128xbf16>
      %c0_14 = arith.constant 0 : index
      %c0_15 = arith.constant 0 : index
      %28 = vector.load %arg9[%c0_14, %c0_15] : memref<128x128xf32, #tpu.memory_space<vmem>>, vector<128x128xf32>
      %29 = arith.truncf %28 : vector<128x128xf32> to vector<128x128xbf16>
      %30 = tpu.concatenate %27, %29 in 1 : vector<128x128xbf16>, vector<128x128xbf16> -> vector<128x256xbf16>
      %c0_16 = arith.constant 0 : index
      %c0_17 = arith.constant 0 : index
      %c0_18 = arith.constant 0 : index
      %31 = vector.load %arg5[%c0_16, %c0_17, %c0_18] : memref<1x256x128xbf16, #tpu.memory_space<vmem>>, vector<1x256x128xbf16>
      %32 = vector.shape_cast %31 : vector<1x256x128xbf16> to vector<256x128xbf16>
      %cst_19 = arith.constant dense<0.000000e+00> : vector<128x128xf32>
      %33 = tpu.matmul %30, %32, %cst_19 {dimension_numbers = #tpu.dot_dimension_numbers<[1], [0], [0], [1], [0, 0, 1, 1], [], []>} : vector<128x256xbf16>, vector<256x128xbf16>, vector<128x128xf32> -> vector<128x128xf32>
      %c0_20 = arith.constant 0 : index
      %c0_21 = arith.constant 0 : index
      %c0_22 = arith.constant 0 : index
      %34 = vector.load %arg6[%c0_20, %c0_21, %c0_22] : memref<1x1x128xf32, #tpu.memory_space<vmem>>, vector<1x1x128xf32>
      %35 = vector.shape_cast %34 : vector<1x1x128xf32> to vector<1x128xf32>
      %36 = vector.broadcast %35 : vector<1x128xf32> to vector<128x128xf32>
      %37 = arith.addf %33, %36 : vector<128x128xf32>
      %c2_i32 = arith.constant 2 : i32
      %38 = arith.cmpi slt, %arg0, %c2_i32 : i32
      %cst_23 = arith.constant 0.000000e+00 : f32
      %39 = vector.broadcast %cst_23 : f32 to vector<128x128xf32>
      %40 = arith.maximumf %37, %39 : vector<128x128xf32>
      %41 = arith.select %38, %40, %37 : vector<128x128xf32>
      %c2_i32_24 = arith.constant 2 : i32
      %42 = arith.cmpi slt, %arg0, %c2_i32_24 : i32
      %43 = arith.extui %42 : i1 to i32
      %c0_i32_25 = arith.constant 0 : i32
      %44 = arith.cmpi ne, %43, %c0_i32_25 : i32
      scf.if %44 {
        %48 = arith.truncf %41 : vector<128x128xf32> to vector<128x128xbf16>
        %c1_i32 = arith.constant 1 : i32
        %49 = arith.addi %arg0, %c1_i32 : i32
        %c128_i32_28 = arith.constant 128 : i32
        %50 = arith.muli %arg1, %c128_i32_28 : i32
        %51 = tpu.assume_multiple %50, 128 : i32
        %52 = arith.index_cast %49 : i32 to index
        %53 = arith.index_cast %51 : i32 to index
        %c0_29 = arith.constant 0 : index
        %54 = vector.load %arg8[%52, %53, %c0_29] : memref<3x128x128xbf16, #tpu.memory_space<vmem>>, vector<1x128x128xbf16>
        %55 = vector.shape_cast %54 : vector<1x128x128xbf16> to vector<128x128xbf16>
        %56 = vector.shape_cast %48 : vector<128x128xbf16> to vector<1x128x128xbf16>
        tpu.vector_store %arg8[%52, %53, %c0_29], %56 {strides = array<i32>} : memref<3x128x128xbf16, #tpu.memory_space<vmem>>, vector<1x128x128xbf16>,
      } else {
      }
      %c2_i32_26 = arith.constant 2 : i32
      %45 = arith.cmpi eq, %arg0, %c2_i32_26 : i32
      %46 = arith.extui %45 : i1 to i32
      %c0_i32_27 = arith.constant 0 : i32
      %47 = arith.cmpi ne, %46, %c0_i32_27 : i32
      scf.if %47 {
        %c0_28 = arith.constant 0 : index
        %c0_29 = arith.constant 0 : index
        %48 = vector.load %arg7[%c0_28, %c0_29] : memref<128x128xf32, #tpu.memory_space<vmem>>, vector<128x128xf32>
        tpu.vector_store %arg7[%c0_28, %c0_29], %41 {strides = array<i32>} : memref<128x128xf32, #tpu.memory_space<vmem>>, vector<128x128xf32>,
      } else {
      }
    } else {
    }
    return
  }
  func.func @transform_0(%arg0: i32, %arg1: i32, %arg2: i32) -> (i32, i32) {
    %c0_i32 = arith.constant 0 : i32
    return %arg1, %arg2 : i32, i32
  }
  func.func @transform_1(%arg0: i32, %arg1: i32, %arg2: i32) -> (i32, i32) {
    %c0_i32 = arith.constant 0 : i32
    %c0_i32_0 = arith.constant 0 : i32
    return %arg2, %c0_i32 : i32, i32
  }
  func.func @transform_2(%arg0: i32, %arg1: i32, %arg2: i32) -> (i32, i32, i32) {
    %c0_i32 = arith.constant 0 : i32
    %c0_i32_0 = arith.constant 0 : i32
    %c0_i32_1 = arith.constant 0 : i32
    return %arg0, %c0_i32, %c0_i32_0 : i32, i32, i32
  }
  func.func @transform_3(%arg0: i32, %arg1: i32, %arg2: i32) -> (i32, i32, i32) {
    %c0_i32 = arith.constant 0 : i32
    %c0_i32_0 = arith.constant 0 : i32
    %c0_i32_1 = arith.constant 0 : i32
    return %arg0, %c0_i32, %c0_i32_0 : i32, i32, i32
  }
  func.func @transform_4(%arg0: i32, %arg1: i32, %arg2: i32) -> (i32, i32) {
    %c0_i32 = arith.constant 0 : i32
    %c0_i32_0 = arith.constant 0 : i32
    return %arg1, %c0_i32 : i32, i32
  }
}

</mosaic_0001>

<bundles_post_ra>
// kernel: tpu_custom_call.1
= control target key start
LH: loop header
LB: loop body
LE: loop exit
PB: predicated region body
PF: predicated region fallthrough
CT: control target
= control target key end

     0   :  { %9 = vsyncpa [#allocation5], 0  ;;  %s1996_s0 = inlined_call_operand.hbm [shape: bf16[128,128], index: 0, kind: input, shape index: {}]   ;;  %s1997_s1 = inlined_call_operand.hbm [shape: bf16[128,128], index: 1, kind: input, shape index: {}]   ;;  %s1998_s2 = inlined_call_operand.hbm [shape: bf16[3,256,128], index: 2, kind: input, shape index: {}]   ;;  %s1999_s3 = inlined_call_operand.vmem [shape: f32[3,1,128], index: 3, kind: input, shape index: {}]   ;;  %s2000_s4 = inlined_call_operand.hbm [shape: f32[128,128], index: 4, kind: output, shape index: {}]  }
   0x1   :  { %10 = vsyncpa [#allocation8], 0 }
   0x2   :  { %11 = vsyncpa [#allocation6], 0  ;;  %s1623_s15 = smov 0   ;;  %s1625_s16 = smov 0  }
   0x3   :  { %s1627_s17 = smov 0   ;;  %s1629_s18 = smov 0  }
   0x4   :  { %s1631_s19 = smov 0   ;;  %s1633_s20 = smov 0  }
   0x5 LB: > { %s1652_s21 = sadd.s32 4294967295, %s1588_s20   ;;  %p104_p0 = scmp.ne.s32.totalorder %s1576_s17, %s1572_s16  ;;  %s1588_s20 = sphi %s1633_s20, %s17_s20   ;;  %s1584_s19 = sphi %s1631_s19, %s2022_s19   ;;  %s1580_s18 = sphi %s1629_s18, %s2021_s18   ;;  %s1576_s17 = sphi %s1627_s17, %s2020_s17   ;;  %s1572_s16 = sphi %s1625_s16, %s2019_s16   ;;  %s1568_s15 = sphi %s1623_s15, %s2018_s15  }
   0x6   : > { %p105_p1 = scmp.eq.s32.totalorder %s1588_s20, 0  ;;  %p110_p2 = scmp.ne.s32.totalorder %s1572_s16, %s1568_s15 }
   0x7   : > { %p2001_p3 = scmp.eq.s32.totalorder %s1652_s21, 0  ;;  %p1098_p4 = scmp.ge.s32.totalorder %s1588_s20, 1 }
   0x8   : > { %p106_p5 = por %p105_p1, %p104_p0  ;;  %p173_p6 = scmp.lt.s32.totalorder %s1588_s20, 4 }
   0x9   : > { %p1663_p7 = por %p2001_p3, %p110_p2  ;;  %s1590_s24 = smov [#allocation4]  }
   0xa   : > { %p1667_p8 = pnand %p1098_p4, %p173_p6  ;;  %s189_s25 = sshll.u32 %s1590_s24, 4  ;;  %s190_s25 = int_to_ptr.vmem [resolvable:$true] %s189_s25 }
   0xb   : > { %s2005_s22 = scalar_select %p1663_p7, 1, 0 }
   0xc   : > { %s2006_s23 = scalar_select %p1667_p8, 1, 0 }
   0xd   : > { %p1309_p9 = pneg %p1667_p8  ;;  %p1322_p11 = scmp.lt.s32.totalorder %s1588_s20, 3 }
   0xe   : > { %s1414_s30 = scalar_lea.hbm %s1996_s0, 1024 }
   0xf   : > { %p1675_p10 = pnand %p1309_p9, %p2001_p3  ;;  %p1680_p12 = pnand %p1322_p11, %p106_p5 }
  0x10   : > { %p1415_p13 = scmp.ne.s32.totalorder %s1996_s0, %s1414_s30  ;;  %p1421_p4 = scmp.lt.u32.totalorder %s1414_s30, %s1996_s0 }
  0x11   : > { %s2008_s27 = scalar_select %p1680_p12, 1, 0 }
  0x12   : > { %p1416_p0 = pneg %p1675_p10 }
  0x14   : > { %p1417_p1 = pnand %p1416_p0, %p1415_p13 }
  0x16   : > { %p1418_p2 = pneg %p1417_p1 }
  0x18   : > { %p1423_p5 = pnand %p1421_p4, %p1418_p2 }
  0x1a   : > { %1426 = shalt.err (!%p1423_p5)
}
  0x1b   : > { %s1427_s9 = scalar_lea.vmem %s190_s25, 1024  ;;  %p1435_p3 = scmp.lt.s32.totalorder %s190_s25, %s190_s25 }
  0x1c   : > { %p1428_p6 = scmp.ne.s32.totalorder %s190_s25, %s1427_s9  ;;  %p1436_p7 = scmp.lt.s32.totalorder %s1427_s9, %s1427_s9 }
  0x1e   : > { %p1430_p9 = pnand %p1428_p6, %p1416_p0  ;;  %p1437_p8 = por %p1436_p7, %p1435_p3 }
  0x20   : > { %p1431_p11 = pneg %p1430_p9 }
  0x22   : > { %p1438_p12 = pnand %p1437_p8, %p1431_p11 }
  0x24   : > { %1441 = shalt.err (!%p1438_p12)
}
  0x25   : > { %s1591_s10 = smov 64   ;;  %s1592_s11 = smov 4  }
  0x26   : > { %1312 = dma.hbm_to_vmem [thread:$0]  (!%p1675_p10), %s1996_s0, 1024, %s190_s25, [#allocation5], %s1591_s10, %s1591_s10, %s1592_s11  }
  0x27   : > { %s1593_s14 = smov [#allocation7]   ;;  %s1442_s29 = scalar_lea.hbm %s1997_s1, 1024 }
  0x28   : > { %s205_s15 = sshll.u32 %s1593_s14, 4  ;;  %p1443_p3 = scmp.ne.s32.totalorder %s1997_s1, %s1442_s29  ;;  %s206_s15 = int_to_ptr.vmem [resolvable:$true] %s205_s15 }
  0x29   : > { %p1449_p12 = scmp.lt.u32.totalorder %s1442_s29, %s1997_s1 }
  0x2a   : > { %p1445_p7 = pnand %p1443_p3, %p1416_p0 }
  0x2c   : > { %p1446_p8 = pneg %p1445_p7 }
  0x2e   : > { %p1451_p13 = pnand %p1449_p12, %p1446_p8 }
  0x30   : > { %1454 = shalt.err (!%p1451_p13)
}
  0x31   : > { %s1455_s25 = scalar_lea.vmem %s206_s15, 1024  ;;  %p1463_p5 = scmp.lt.s32.totalorder %s206_s15, %s206_s15 }
  0x32   : > { %p1456_p1 = scmp.ne.s32.totalorder %s206_s15, %s1455_s25  ;;  %p1464_p6 = scmp.lt.s32.totalorder %s1455_s25, %s1455_s25 }
  0x34   : > { %p1458_p2 = pnand %p1456_p1, %p1416_p0  ;;  %p1465_p9 = por %p1464_p6, %p1463_p5 }
  0x36   : > { %p1459_p4 = pneg %p1458_p2 }
  0x38   : > { %p1466_p11 = pnand %p1465_p9, %p1459_p4 }
  0x3a   : > { %1469 = shalt.err (!%p1466_p11)
}
  0x3b   : > { %1315 = dma.hbm_to_vmem [thread:$0]  (!%p1675_p10), %s1997_s1, 1024, %s206_s15, [#allocation8], %s1591_s10, %s1591_s10, %s1592_s11  }
  0x3c   : > { %s36_s12 = sadd.s32 1, %s1584_s19  ;;  %s97_s13 = sadd.s32 1, %s1576_s17 }
  0x3d   : > { %p38_p0 = scmp.ge.s32.totalorder %s36_s12, 3  ;;  %s219_s14 = sand.u32 1, %s1588_s20  }
  0x3e   : > { %s221_s26 = sand.u32 1, %s1576_s17   ;;  %s1162_s28 = sshll.u32 %s1584_s19, 11 }
  0x3f   : > { %s2024_s12 = smov (%p38_p0, %s36_s12), 0  ;;  %s1102_s24 = sshll.u32 %s221_s26, 7 }
  0x40   : > { %s94_s29 = ssub.s32 %s1584_s19, %s2024_s12  ;;  %s1744_s6 = scalar_lea.hbm %s1998_s2, %s1162_s28 }
  0x41   : > { %p95_p3 = scmp.eq.s32.totalorder %s94_s29, 0  ;;  %s223_s15 = scalar_lea.vmem [#allocation9], %s1102_s24 }
  0x42   : > { %s230_s7 = sshll.u32 %s223_s15, 4  ;;  %s1751_s8 = scalar_lea.sflag [#allocation5], %s219_s14  ;;  %s1749_s7 = int_to_ptr.vmem [resolvable:$true] %s230_s7 }
  0x43   : > { %s1747_s25 = scalar_select %p95_p3, %s1576_s17, %s97_s13  }
  0x44   : > { %s1470_s9 = scalar_lea.hbm %s1744_s6, 2048  ;;  %p2009_p7 = scmp.ne.s32.totalorder %s2008_s27, 0 }
  0x45   : > { %p1471_p10 = scmp.ne.s32.totalorder %s1744_s6, %s1470_s9  ;;  %s1475_s29 = scalar_lea.hbm %s1998_s2, 6144 }
  0x46   : > { %p1472_p8 = pneg %p2009_p7  ;;  %p1476_p1 = scmp.lt.u32.totalorder %s1744_s6, %s1998_s2 }
  0x47   : > { %p1477_p2 = scmp.lt.u32.totalorder %s1475_s29, %s1470_s9  ;;  %p1479_p5 = scmp.lt.u32.totalorder %s1470_s9, %s1744_s6 }
  0x48   : > { %p1473_p12 = pnand %p1472_p8, %p1471_p10 }
  0x49   : > { %p1478_p4 = por %p1477_p2, %p1476_p1 }
  0x4a   : > { %p1474_p13 = pneg %p1473_p12 }
  0x4b   : > { %p1480_p6 = por %p1479_p5, %p1478_p4 }
  0x4d   : > { %p1481_p9 = pnand %p1480_p6, %p1474_p13 }
  0x4f   : > { %1484 = shalt.err (!%p1481_p9)
}
  0x50   : > { %s1485_s13 = scalar_lea.vmem %s1749_s7, 2048  ;;  %s1594_s14 = smov [#allocation9]  }
  0x51   : > { %p1486_p11 = scmp.ne.s32.totalorder %s1749_s7, %s1485_s13  ;;  %s1490_s5 = sshll.u32 %s1594_s14, 4  ;;  %s1491_s5 = int_to_ptr.vmem [resolvable:$false] %s1490_s5 }
  0x52   : > { %s1492_s15 = scalar_lea.vmem %s1491_s5, 4096  ;;  %p1493_p10 = scmp.lt.s32.totalorder %s1749_s7, %s1491_s5 }
  0x53   : > { %p1488_p0 = pnand %p1486_p11, %p1472_p8  ;;  %p1494_p12 = scmp.lt.s32.totalorder %s1492_s15, %s1485_s13 }
  0x55   : > { %p1489_p3 = pneg %p1488_p0  ;;  %p1495_p1 = por %p1494_p12, %p1493_p10 }
  0x57   : > { %p1496_p2 = pnand %p1495_p1, %p1489_p3 }
  0x59   : > { %1499 = shalt.err (!%p1496_p2)
}
  0x5a   : > { %1319 = dma.hbm_to_vmem [thread:$0]  (!%p2009_p7), %s1744_s6, 2048, %s1749_s7, %s1751_s8, %s1591_s10, %s1591_s10, %s1592_s11  }
  0x5b   : > { %p2010_p8 = scmp.ne.s32.totalorder %s2006_s23, 0 }
  0x5c   : > { %p2011_p13 = scmp.eq.s32.totalorder (!%p2010_p8), %s1652_s21, 0 }
  0x5d   : > { %248 = sbr.rel (%p2010_p8) target bundleno = 671 (0x29f), region = 36 }
  0x64   : > { %1551 = dma.done.wait (%p2011_p13), [#allocation5], 1024   ;;  %p2012_p4 = pmov %p2011_p13 }
  0x66   : > { %1553 = vsyncadd (%p2012_p4), [#allocation5], 4294966272  ;;  %p2013_p5 = pmov %p2012_p4 }
  0x67   : > { %p2014_p6 = pmov %p2012_p4 }
  0x68   : > { %1555 = dma.done.wait (%p2013_p5), [#allocation8], 1024  }
  0x69   : > { %1557 = vsyncadd (%p2014_p6), [#allocation8], 4294966272  ;;  %s258_s27 = sand.u32 1, %s1652_s21   ;;  %s260_s10 = sand.u32 1, %s1572_s16  }
  0x6a   : > { %s1108_s11 = sshll.u32 %s260_s10, 7  ;;  %s259_s23 = scalar_lea.sflag [#allocation5], %s258_s27 }
  0x6b   : > { %s1794_s6 = scalar_lea.vmem [#allocation9], %s1108_s11  ;;  %p2015_p7 = scmp.ne.s32.totalorder %s2005_s22, 0 }
  0x6d   : > { %1559 = dma.done.wait (%p2015_p7), %s259_s23, 2048  }
  0x6e   : > { %1561 = vsyncadd (%p2015_p7), %s259_s23, 4294965248  ;;  %p287_p9 = scmp.lt.s32.totalorder %s1580_s18, 2  ;;  %p292_p11 = scmp.eq.s32.totalorder %s1580_s18, 0 }
  0x6f   : > { %v1382_v0 = vld [vmem:[#allocation7] sm:$0xff] (%p292_p11)   ;;  %v1383_v1 = vld [vmem:[#allocation7 + $0x8] sm:$0xff] (%p292_p11)   ;;  %v1384_v2 = vld [vmem:[#allocation7 + $0x10] sm:$0xff] (%p292_p11)  }
  0x70   : > { %s1805_s7 = scalar_select %p287_p9, %s1580_s18, 2 }
  0x71   : > { %297 = sbr.rel (!%p292_p11) target bundleno = 120 (0x78), region = 52  ;;  %367 = vst [vmem:[#allocation2] sm:$0xff] (%p292_p11), %v1382_v0  ;;  %368 = vst [vmem:[#allocation2 + $0x8] sm:$0xff] (%p292_p11), %v1383_v1  ;;  %v1385_v3 = vld [vmem:[#allocation7 + $0x18] sm:$0xff] (%p292_p11)   ;;  %v1386_v4 = vld [vmem:[#allocation7 + $0x20] sm:$0xff] (%p292_p11)  }
  0x72   : > { %s289_s26 = scalar_lea.vmem %s1999_s3, %s1805_s7  ;;  %369 = vst [vmem:[#allocation2 + $0x10] sm:$0xff] (%p292_p11), %v1384_v2  ;;  %370 = vst [vmem:[#allocation2 + $0x18] sm:$0xff] (%p292_p11), %v1385_v3  ;;  %v1387_v5 = vld [vmem:[#allocation7 + $0x28] sm:$0xff] (%p292_p11)   ;;  %v1388_v6 = vld [vmem:[#allocation7 + $0x30] sm:$0xff] (%p292_p11)  }
  0x73   : > { %371 = vst [vmem:[#allocation2 + $0x20] sm:$0xff] (%p292_p11), %v1386_v4  ;;  %372 = vst [vmem:[#allocation2 + $0x28] sm:$0xff] (%p292_p11), %v1387_v5  ;;  %v1389_v7 = vld [vmem:[#allocation7 + $0x38] sm:$0xff] (%p292_p11)  }
  0x74   : > { %373 = vst [vmem:[#allocation2 + $0x30] sm:$0xff] (%p292_p11), %v1388_v6  ;;  %374 = vst [vmem:[#allocation2 + $0x38] sm:$0xff] (%p292_p11), %v1389_v7 }
  0x78 PF: > { %s1164_s22 = sshll.u32 %s1580_s18, 6  ;;  %v1390_v8 = vld [vmem:[#allocation4] sm:$0xff]   ;;  %v1400_v15 = vld [vmem:[%s1794_s6 + $0x48] sm:$0xff]   ;;  %v1402_v18 = vld [vmem:[%s1794_s6 + $0x50] sm:$0xff]   ;;  %p1157_p0 = scmp.ne.s32.totalorder %s1580_s18, 2 }
  0x79   : > { %s1812_s28 = scalar_lea.vmem [#allocation2], %s1164_s22  ;;  %1263 = vmatprep.mubr.bf16.mxu0 %v1390_v8  ;;  %v1398_v13 = vld [vmem:[%s1794_s6 + $0x40] sm:$0xff]   ;;  %v1401_v17 = vld [vmem:[%s1794_s6 + $0x8] sm:$0xff]   ;;  %v1403_v20 = vld [vmem:[%s1794_s6 + $0x10] sm:$0xff]  }
  0x7a   : > { %v1399_v14 = vld [vmem:[%s1794_s6] sm:$0xff]   ;;  %1279 = vmatprep.subr.bf16.mxu1 %v1398_v13  ;;  %v1404_v21 = vld [vmem:[%s1794_s6 + $0x58] sm:$0xff]   ;;  %v1408_v27 = vld [vmem:[%s1794_s6 + $0x68] sm:$0xff]   ;;  %s909_s29 = scalar_select %p287_p9, 1, 0 }
  0x7b   : > { %v1815_v9 = vld [vmem:[%s1812_s28] sm:$0xff]  ;;  %v1818_v10 = vld [vmem:[%s1812_s28 + $0x8] sm:$0xff]  ;;  %v1824_v11 = vld [vmem:[%s1812_s28 + $0x10] sm:$0xff]  ;;  %1287 = vmatpush3.bf16.msra.mxu1 %v1399_v14 }
  0x7c   : > { %1247 = vmatprep.subr.bf16.mxu0 %v1815_v9  ;;  %v1829_v12 = vld [vmem:[%s1812_s28 + $0x18] sm:$0xff]  ;;  %v1837_v16 = vld [vmem:[%s1812_s28 + $0x20] sm:$0xff]  ;;  %1280 = vmatprep.subr.bf16.mxu1 %v1400_v15  ;;  %v1844_v19 = vld [vmem:[%s1812_s28 + $0x28] sm:$0xff]  ;;  %v910_v6 = vstv %s909_s29 }
  0x7d   : > { %1248 = vmatpush3.bf16.msra.mxu0 %v1815_v9  ;;  %v1851_v22 = vld [vmem:[%s1812_s28 + $0x30] sm:$0xff]  ;;  %v1405_v23 = vld [vmem:[%s1794_s6 + $0x18] sm:$0xff]   ;;  %v1406_v24 = vld [vmem:[%s1794_s6 + $0x60] sm:$0xff]   ;;  %vm1889_vm0 = vcmp.eq.s32.totalorder %v910_v6, 1 }
  0x7e   : > { %1249 = vmatprep.subr.bf16.mxu0 %v1818_v10  ;;  %v1858_v25 = vld [vmem:[%s1812_s28 + $0x38] sm:$0xff]  ;;  %v1407_v26 = vld [vmem:[%s1794_s6 + $0x20] sm:$0xff]   ;;  %v1391_v28 = vld [vmem:[#allocation4 + $0x8] sm:$0xff]  }
  0x7f   : > { %1288 = vmatpush3.bf16.msra.mxu1 %v1401_v17  ;;  %v1392_v29 = vld [vmem:[#allocation4 + $0x10] sm:$0xff]   ;;  %v1409_v30 = vld [vmem:[%s1794_s6 + $0x28] sm:$0xff]   ;;  %v1393_v32 = vld [vmem:[#allocation4 + $0x18] sm:$0xff]  }
  0x80   : > { %1281 = vmatprep.subr.bf16.mxu1 %v1402_v18  ;;  %v1410_v31 = vld [vmem:[%s1794_s6 + $0x70] sm:$0xff]   ;;  %v1394_v33 = vld [vmem:[#allocation4 + $0x20] sm:$0xff]   ;;  %v1395_v34 = vld [vmem:[#allocation4 + $0x28] sm:$0xff]  }
  0x81   : > { %1250 = vmatpush3.bf16.msra.mxu0 %v1818_v10  ;;  %v1396_v35 = vld [vmem:[#allocation4 + $0x30] sm:$0xff]   ;;  %v1397_v36 = vld [vmem:[#allocation4 + $0x38] sm:$0xff]   ;;  %v1885_v4 = vld [vmem:[%s289_s26] ss:$0 sm:$0xff] }
  0x82   : > { %1251 = vmatprep.subr.bf16.mxu0 %v1824_v11  ;;  %v1411_v37 = vld [vmem:[%s1794_s6 + $0x30] sm:$0xff]   ;;  %v1412_v38 = vld [vmem:[%s1794_s6 + $0x78] sm:$0xff]  }
  0x83   : > { %1289 = vmatpush3.bf16.msra.mxu1 %v1403_v20  ;;  %v1413_v39 = vld [vmem:[%s1794_s6 + $0x38] sm:$0xff]  }
  0x84   : > { %1282 = vmatprep.subr.bf16.mxu1 %v1404_v21 }
  0x85   : > { %1252 = vmatpush3.bf16.msra.mxu0 %v1824_v11 }
  0x86   : > { %1253 = vmatprep.subr.bf16.mxu0 %v1829_v12 }
  0x87   : > { %1290 = vmatpush3.bf16.msra.mxu1 %v1405_v23 }
  0x88   : > { %1283 = vmatprep.subr.bf16.mxu1 %v1406_v24 }
  0x89   : > { %1254 = vmatpush3.bf16.msra.mxu0 %v1829_v12 }
  0x8a   : > { %1255 = vmatprep.subr.bf16.mxu0 %v1837_v16 }
  0x8b   : > { %1291 = vmatpush3.bf16.msra.mxu1 %v1407_v26 }
  0x8c   : > { %1284 = vmatprep.subr.bf16.mxu1 %v1408_v27 }
  0x8d   : > { %1256 = vmatpush3.bf16.msra.mxu0 %v1837_v16 }
  0x8e   : > { %1257 = vmatprep.subr.bf16.mxu0 %v1844_v19 }
  0x8f   : > { %1292 = vmatpush3.bf16.msra.mxu1 %v1409_v30 }
  0x90   : > { %1285 = vmatprep.subr.bf16.mxu1 %v1410_v31 }
  0x91   : > { %1258 = vmatpush3.bf16.msra.mxu0 %v1844_v19 }
  0x92   : > { %1259 = vmatprep.subr.bf16.mxu0 %v1851_v22 }
  0x93   : > { %1293 = vmatpush3.bf16.msra.mxu1 %v1411_v37 }
  0x94   : > { %1286 = vmatprep.subr.bf16.mxu1 %v1412_v38 }
  0x95   : > { %1260 = vmatpush3.bf16.msra.mxu0 %v1851_v22 }
  0x96   : > { %1261 = vmatprep.subr.bf16.mxu0 %v1858_v25 }
  0x97   : > { %1294 = vmatpush3.bf16.msra.mxu1 %v1413_v39 }
  0x99   : > { %1262 = vmatpush3.bf16.msra.mxu0 %v1858_v25 }
  0x9a   : > { %1183 = vmatprep.subr.bf16.mxu0 %v1398_v13 }
  0x9c   : > { %1264 = vmatmul.mubr.bf16.vlgmr.msra.gmra.mrb[0].mxu0 %v1391_v28 }
  0x9d   : > { %1267 = vmatprep.mubr.bf16.mxu0 %v1392_v29  ;;  %1184 = vmatpush3.bf16.msra.mxu0 %v1399_v14 }
  0x9e   : > { %1185 = vmatprep.subr.bf16.mxu0 %v1400_v15 }
  0xa1   : > { %1186 = vmatpush3.bf16.msra.mxu0 %v1401_v17 }
  0xa2   : > { %1187 = vmatprep.subr.bf16.mxu0 %v1402_v18 }
  0xa4   : > { %1268 = vmatmul.mubr.bf16.gmra.mrb[4].mxu0 %v1393_v32 }
  0xa5   : > { %1271 = vmatprep.mubr.bf16.mxu0 %v1394_v33  ;;  %1188 = vmatpush3.bf16.msra.mxu0 %v1403_v20 }
  0xa6   : > { %1189 = vmatprep.subr.bf16.mxu0 %v1404_v21 }
  0xa9   : > { %1190 = vmatpush3.bf16.msra.mxu0 %v1405_v23 }
  0xaa   : > { %1191 = vmatprep.subr.bf16.mxu0 %v1406_v24 }
  0xac   : > { %1272 = vmatmul.mubr.bf16.gmra.mrb[8].mxu0 %v1395_v34 }
  0xad   : > { %1275 = vmatprep.mubr.bf16.mxu0 %v1396_v35  ;;  %1192 = vmatpush3.bf16.msra.mxu0 %v1407_v26 }
  0xae   : > { %1193 = vmatprep.subr.bf16.mxu0 %v1408_v27 }
  0xb1   : > { %1194 = vmatpush3.bf16.msra.mxu0 %v1409_v30 }
  0xb2   : > { %1195 = vmatprep.subr.bf16.mxu0 %v1410_v31 }
  0xb4   : > { %1276 = vmatmul.mubr.bf16.gmra.mrb[12].mxu0 %v1397_v36 }
  0xb5   : > { %1196 = vmatpush3.bf16.msra.mxu0 %v1411_v37 }
  0xb6   : > { %1197 = vmatprep.subr.bf16.mxu0 %v1412_v38 }
  0xb9   : > { %1198 = vmatpush3.bf16.msra.mxu0 %v1413_v39 }
 0x16f   : > { %v1265_v40 = vpop.f32.mrb[0].mxu0 }
 0x170   : > { %v524_v41 = vpop.f32.mrb[1].mxu0 }
 0x171   : > { %v1266_v42 = vpop.f32.mrb[2].mxu0 }
 0x172   : > { %v653_v43 = vpack.c.bf16 %v1266_v42, %v1265_v40  ;;  %v527_v44 = vpop.f32.mrb[3].mxu0 }
 0x173   : > { %v652_v45 = vpack.c.bf16 %v527_v44, %v524_v41 }
 0x175   : > { %827 = vmatprep.mubr.bf16.mxu0 %v652_v45 }
 0x176   : > { %828 = vmatmul.mubr.bf16.vlgmr.msra.gmra.mrb[16].mxu0 %v1815_v9 }
 0x177   : > { %v1269_v46 = vpop.f32.mrb[4].mxu0  ;;  %835 = vmatprep.mubr.bf16.mxu0 %v653_v43 }
 0x178   : > { %v540_v47 = vpop.f32.mrb[5].mxu0 }
 0x179   : > { %v1270_v48 = vpop.f32.mrb[6].mxu0 }
 0x17a   : > { %v655_v49 = vpack.c.bf16 %v1270_v48, %v1269_v46  ;;  %v543_v50 = vpop.f32.mrb[7].mxu0 }
 0x17b   : > { %v654_v51 = vpack.c.bf16 %v543_v50, %v540_v47 }
 0x17d   : > { %843 = vmatprep.mubr.bf16.mxu1 %v654_v51 }
 0x17e   : > { %844 = vmatmul.mubr.bf16.vlgmr.msra.gmra.mrb[0].mxu1 %v1824_v11  ;;  %836 = vmatmul.mubr.bf16.gmra.mrb[20].mxu0 %v1818_v10 }
 0x17f   : > { %851 = vmatprep.mubr.bf16.mxu1 %v655_v49  ;;  %v1273_v52 = vpop.f32.mrb[8].mxu0 }
 0x180   : > { %v556_v53 = vpop.f32.mrb[9].mxu0 }
 0x181   : > { %v1274_v54 = vpop.f32.mrb[10].mxu0 }
 0x182   : > { %v657_v55 = vpack.c.bf16 %v1274_v54, %v1273_v52  ;;  %v559_v56 = vpop.f32.mrb[11].mxu0 }
 0x183   : > { %v656_v57 = vpack.c.bf16 %v559_v56, %v556_v53 }
 0x186   : > { %852 = vmatmul.mubr.bf16.gmra.mrb[4].mxu1 %v1829_v12 }
 0x187   : > { %859 = vmatprep.mubr.bf16.mxu1 %v656_v57  ;;  %v1277_v58 = vpop.f32.mrb[12].mxu0 }
 0x188   : > { %v572_v59 = vpop.f32.mrb[13].mxu0 }
 0x189   : > { %v1278_v60 = vpop.f32.mrb[14].mxu0 }
 0x18a   : > { %v659_v61 = vpack.c.bf16 %v1278_v60, %v1277_v58  ;;  %v575_v62 = vpop.f32.mrb[15].mxu0 }
 0x18b   : > { %v658_v63 = vpack.c.bf16 %v575_v62, %v572_v59 }
 0x18e   : > { %860 = vmatmul.mubr.bf16.gmra.mrb[8].mxu1 %v1837_v16 }
 0x18f   : > { %867 = vmatprep.mubr.bf16.mxu1 %v657_v55 }
 0x196   : > { %868 = vmatmul.mubr.bf16.gmra.mrb[12].mxu1 %v1844_v19 }
 0x197   : > { %875 = vmatprep.mubr.bf16.mxu1 %v658_v63 }
 0x19e   : > { %876 = vmatmul.mubr.bf16.gmra.mrb[16].mxu1 %v1851_v22 }
 0x19f   : > { %883 = vmatprep.mubr.bf16.mxu1 %v659_v61 }
 0x1a6   : > { %884 = vmatmul.mubr.bf16.gmra.mrb[20].mxu1 %v1858_v25 }
 0x249   : > { %v1199_v0 = vpop.f32.mrb[16].mxu0 }
 0x24a   : > { %v1200_v1 = vpop.f32.mrb[17].mxu0 }
 0x24b   : > { %v1201_v2 = vadd.f32 %v1200_v1, %v1199_v0  ;;  %v1202_v3 = vpop.f32.mrb[18].mxu0 }
 0x24c   : > { %v1203_v5 = vpop.f32.mrb[19].mxu0 }
 0x24d   : > { %v830_v7 = vadd.f32 %v1201_v2, %v1885_v4  ;;  %v1204_v8 = vadd.f32 %v1203_v5, %v1202_v3 }
 0x24f   : > { %v893_v9 = vmax.f32 %v830_v7, 0.0  ;;  %v833_v10 = vadd.f32 %v1204_v8, %v1885_v4 }
 0x251   : > { %v1211_v12 = vpop.f32.mrb[0].mxu1  ;;  %v1895_v13 = vsel %vm1889_vm0, %v893_v9, %v830_v7  ;;  %v894_v14 = vmax.f32 %v833_v10, 0.0  ;;  %v1205_v15 = vpop.f32.mrb[20].mxu0 }
 0x252   : > { %v1212_v16 = vpop.f32.mrb[1].mxu1  ;;  %v1206_v17 = vpop.f32.mrb[21].mxu0  ;;  %956 = vst [vmem:[#allocation10] sm:$0xff] (!%p1157_p0), %v1895_v13 }
 0x253   : > { %v1213_v18 = vadd.f32 %v1212_v16, %v1211_v12  ;;  %v1214_v19 = vpop.f32.mrb[2].mxu1  ;;  %v1899_v20 = vsel %vm1889_vm0, %v894_v14, %v833_v10  ;;  %v1207_v21 = vadd.f32 %v1206_v17, %v1205_v15  ;;  %v1208_v22 = vpop.f32.mrb[22].mxu0 }
 0x254   : > { %v1215_v23 = vpop.f32.mrb[3].mxu1  ;;  %v1209_v24 = vpop.f32.mrb[23].mxu0  ;;  %957 = vst [vmem:[#allocation10 + $0x8] sm:$0xff] (!%p1157_p0), %v1899_v20 }
 0x255   : > { %v846_v25 = vadd.f32 %v1213_v18, %v1885_v4  ;;  %v1216_v26 = vadd.f32 %v1215_v23, %v1214_v19  ;;  %v838_v27 = vadd.f32 %v1207_v21, %v1885_v4  ;;  %v1210_v28 = vadd.f32 %v1209_v24, %v1208_v22 }
 0x257   : > { %v897_v29 = vmax.f32 %v846_v25, 0.0  ;;  %v849_v30 = vadd.f32 %v1216_v26, %v1885_v4  ;;  %v895_v31 = vmax.f32 %v838_v27, 0.0  ;;  %v841_v32 = vadd.f32 %v1210_v28, %v1885_v4 }
 0x259   : > { %v1907_v33 = vsel %vm1889_vm0, %v897_v29, %v846_v25  ;;  %v898_v34 = vmax.f32 %v849_v30, 0.0  ;;  %v1217_v35 = vpop.f32.mrb[4].mxu1  ;;  %v1911_v36 = vsel %vm1889_vm0, %v895_v31, %v838_v27  ;;  %v896_v37 = vmax.f32 %v841_v32, 0.0 }
 0x25a   : > { %v1218_v38 = vpop.f32.mrb[5].mxu1  ;;  %958 = vst [vmem:[#allocation10 + $0x10] sm:$0xff] (!%p1157_p0), %v1911_v36  ;;  %960 = vst [vmem:[#allocation10 + $0x20] sm:$0xff] (!%p1157_p0), %v1907_v33 }
 0x25b   : > { %v1915_v39 = vsel %vm1889_vm0, %v898_v34, %v849_v30  ;;  %v1219_v40 = vadd.f32 %v1218_v38, %v1217_v35  ;;  %v1220_v41 = vpop.f32.mrb[6].mxu1  ;;  %v915_v42 = vsel %vm1889_vm0, %v896_v37, %v841_v32 }
 0x25c   : > { %v1221_v43 = vpop.f32.mrb[7].mxu1  ;;  %959 = vst [vmem:[#allocation10 + $0x18] sm:$0xff] (!%p1157_p0), %v915_v42  ;;  %961 = vst [vmem:[#allocation10 + $0x28] sm:$0xff] (!%p1157_p0), %v1915_v39 }
 0x25d   : > { %v854_v44 = vadd.f32 %v1219_v40, %v1885_v4  ;;  %v1222_v45 = vadd.f32 %v1221_v43, %v1220_v41 }
 0x25f   : > { %v899_v46 = vmax.f32 %v854_v44, 0.0  ;;  %v857_v47 = vadd.f32 %v1222_v45, %v1885_v4 }
 0x261   : > { %v918_v48 = vsel %vm1889_vm0, %v899_v46, %v854_v44  ;;  %v900_v49 = vmax.f32 %v857_v47, 0.0  ;;  %v1223_v50 = vpop.f32.mrb[8].mxu1 }
 0x262   : > { %v1224_v51 = vpop.f32.mrb[9].mxu1  ;;  %962 = vst [vmem:[#allocation10 + $0x30] sm:$0xff] (!%p1157_p0), %v918_v48 }
 0x263   : > { %v919_v52 = vsel %vm1889_vm0, %v900_v49, %v857_v47  ;;  %v1225_v53 = vadd.f32 %v1224_v51, %v1223_v50  ;;  %v1226_v54 = vpop.f32.mrb[10].mxu1 }
 0x264   : > { %v1227_v55 = vpop.f32.mrb[11].mxu1  ;;  %963 = vst [vmem:[#allocation10 + $0x38] sm:$0xff] (!%p1157_p0), %v919_v52 }
 0x265   : > { %v862_v56 = vadd.f32 %v1225_v53, %v1885_v4  ;;  %v1228_v57 = vadd.f32 %v1227_v55, %v1226_v54 }
 0x267   : > { %v901_v58 = vmax.f32 %v862_v56, 0.0  ;;  %v865_v59 = vadd.f32 %v1228_v57, %v1885_v4 }
 0x269   : > { %v920_v60 = vsel %vm1889_vm0, %v901_v58, %v862_v56  ;;  %v902_v61 = vmax.f32 %v865_v59, 0.0  ;;  %v1229_v62 = vpop.f32.mrb[12].mxu1 }
 0x26a   : > { %v1230_v63 = vpop.f32.mrb[13].mxu1  ;;  %964 = vst [vmem:[#allocation10 + $0x40] sm:$0xff] (!%p1157_p0), %v920_v60 }
 0x26b   : > { %v921_v0 = vsel %vm1889_vm0, %v902_v61, %v865_v59  ;;  %v1231_v1 = vadd.f32 %v1230_v63, %v1229_v62  ;;  %v1232_v2 = vpop.f32.mrb[14].mxu1 }
 0x26c   : > { %v1233_v3 = vpop.f32.mrb[15].mxu1  ;;  %965 = vst [vmem:[#allocation10 + $0x48] sm:$0xff] (!%p1157_p0), %v921_v0 }
 0x26d   : > { %v870_v5 = vadd.f32 %v1231_v1, %v1885_v4  ;;  %v1234_v6 = vadd.f32 %v1233_v3, %v1232_v2 }
 0x26f   : > { %v903_v7 = vmax.f32 %v870_v5, 0.0  ;;  %v873_v8 = vadd.f32 %v1234_v6, %v1885_v4 }
 0x271   : > { %v922_v9 = vsel %vm1889_vm0, %v903_v7, %v870_v5  ;;  %v904_v10 = vmax.f32 %v873_v8, 0.0  ;;  %v1235_v12 = vpop.f32.mrb[16].mxu1 }
 0x272   : > { %v1236_v14 = vpop.f32.mrb[17].mxu1  ;;  %966 = vst [vmem:[#allocation10 + $0x50] sm:$0xff] (!%p1157_p0), %v922_v9 }
 0x273   : > { %v923_v15 = vsel %vm1889_vm0, %v904_v10, %v873_v8  ;;  %v1237_v16 = vadd.f32 %v1236_v14, %v1235_v12  ;;  %v1238_v17 = vpop.f32.mrb[18].mxu1 }
 0x274   : > { %v1239_v18 = vpop.f32.mrb[19].mxu1  ;;  %967 = vst [vmem:[#allocation10 + $0x58] sm:$0xff] (!%p1157_p0), %v923_v15 }
 0x275   : > { %v878_v19 = vadd.f32 %v1237_v16, %v1885_v4  ;;  %v1240_v21 = vadd.f32 %v1239_v18, %v1238_v17 }
 0x277   : > { %v905_v22 = vmax.f32 %v878_v19, 0.0  ;;  %v881_v23 = vadd.f32 %v1240_v21, %v1885_v4 }
 0x279   : > { %v924_v24 = vsel %vm1889_vm0, %v905_v22, %v878_v19  ;;  %v906_v25 = vmax.f32 %v881_v23, 0.0  ;;  %v1241_v26 = vpop.f32.mrb[20].mxu1 }
 0x27a   : > { %v1242_v27 = vpop.f32.mrb[21].mxu1  ;;  %968 = vst [vmem:[#allocation10 + $0x60] sm:$0xff] (!%p1157_p0), %v924_v24 }
 0x27b   : > { %v925_v28 = vsel %vm1889_vm0, %v906_v25, %v881_v23  ;;  %v1243_v29 = vadd.f32 %v1242_v27, %v1241_v26  ;;  %v1244_v30 = vpop.f32.mrb[22].mxu1 }
 0x27c   : > { %v1245_v31 = vpop.f32.mrb[23].mxu1  ;;  %969 = vst [vmem:[#allocation10 + $0x68] sm:$0xff] (!%p1157_p0), %v925_v28 }
 0x27d   : > { %v886_v32 = vadd.f32 %v1243_v29, %v1885_v4  ;;  %v1246_v34 = vadd.f32 %v1245_v31, %v1244_v30  ;;  %955 = sbr.rel (%p1157_p0) target bundleno = 645 (0x285), region = 68 }
 0x27f   : > { %v907_v35 = vmax.f32 %v886_v32, 0.0  ;;  %v889_v37 = vadd.f32 %v1246_v34, %v1885_v4 }
 0x281   : > { %v926_v38 = vsel %vm1889_vm0, %v907_v35, %v886_v32  ;;  %v908_v40 = vmax.f32 %v889_v37, 0.0 }
 0x282   : > { %970 = vst [vmem:[#allocation10 + $0x70] sm:$0xff] (!%p1157_p0), %v926_v38 }
 0x283   : > { %v927_v41 = vsel %vm1889_vm0, %v908_v40, %v889_v37 }
 0x284   : > { %971 = vst [vmem:[#allocation10 + $0x78] sm:$0xff] %v927_v41 }
 0x285 PF: > { %p1325_p3 = scmp.eq.s32.totalorder %s1652_s21, 2  ;;  %s1595_s18 = smov [#allocation10]  }
 0x286   : > { %s981_s13 = sshll.u32 %s1595_s18, 4  ;;  %s982_s13 = int_to_ptr.vmem [resolvable:$true] %s981_s13 }
 0x287   : > { %s1500_s14 = scalar_lea.vmem %s982_s13, 2048  ;;  %p1507_p2 = scmp.lt.s32.totalorder %s982_s13, %s982_s13 }
 0x288   : > { %p1501_p10 = scmp.ne.s32.totalorder %s982_s13, %s1500_s14  ;;  %p1508_p8 = scmp.lt.s32.totalorder %s1500_s14, %s1500_s14 }
 0x28a   : > { %p1502_p12 = pnand %p1501_p10, %p1325_p3  ;;  %p1509_p13 = por %p1508_p8, %p1507_p2 }
 0x28c   : > { %p1503_p1 = pneg %p1502_p12 }
 0x28e   : > { %p1510_p4 = pnand %p1509_p13, %p1503_p1 }
 0x290   : > { %1513 = shalt.err (!%p1510_p4)
}
 0x291   : > { %s1514_s27 = scalar_lea.hbm %s2000_s4, 2048 }
 0x292   : > { %p1515_p5 = scmp.ne.s32.totalorder %s2000_s4, %s1514_s27  ;;  %p1520_p9 = scmp.lt.u32.totalorder %s1514_s27, %s2000_s4 }
 0x294   : > { %p1516_p6 = pnand %p1515_p5, %p1325_p3 }
 0x296   : > { %p1517_p7 = pneg %p1516_p6 }
 0x298   : > { %p1522_p11 = pnand %p1520_p9, %p1517_p7 }
 0x29a   : > { %1525 = shalt.err (!%p1522_p11)
}
 0x29b   : > { %s1596_s7 = smov 128   ;;  %s1597_s8 = smov 8  }
 0x29c   : > { %1306 = dma.vmem_to_hbm [thread:$0]  (%p1325_p3), %s982_s13, 2048, %s2000_s4, [#allocation6], %s1596_s7, %s1596_s7, %s1597_s8  }
 0x29d   : > { %1563 = dma.done.wait (%p1325_p3), [#allocation6], 2048  }
 0x29e   : > { %1565 = vsyncadd (%p1325_p3), [#allocation6], 4294965248 }
 0x29f PF: > { %s17_s20 = sadd.s32 1, %s1588_s20   ;;  %s2018_s15 = smov %s1572_s16 }
 0x2a0   : > { %p14_p0 = scmp.ge.s32.totalorder %s17_s20, 5   ;;  %s2019_s16 = smov %s1576_s17 }
 0x2a1   : > { %s2020_s17 = smov %s1747_s25  ;;  %s2021_s18 = smov %s1584_s19 }
 0x2a2   : > { %s2022_s19 = smov %s2024_s12  ;;  %16 = sbr.rel (!%p14_p0) target bundleno = 5 (0x5), region = 110 }
 0x2a9   :  { %997 = vsyncpa [#allocation5], 1 }
 0x2aa   :  { %999 = vsyncpa [#allocation5 + $0x1], 1 }
 0x2ab   :  { %1000 = vsyncpa [#allocation8], 1 }
 0x2ac   :  { %1001 = vsyncpa [#allocation6], 1 }
 0x2ad   :  { %1003 = vsyncpa [#allocation6 + $0x1], 1 }

</bundles_post_ra>
